<compile_context>
chip_gen: v7x
topology: tpu7x:2x2x1
jax: 0.10.0
libtpu: 0.0.40
codegen_flags: <defaults>
</compile_context>

<pallas_src>
import jax
import jax.numpy as jnp
import numpy as np
from jax.experimental import pallas as pl
from jax.experimental.pallas import tpu as pltpu


def _round_up(n, m):
    return (n + m - 1) // m * m


def policy_kernel(x_ref, w1_ref, b1_ref, w2_ref, b2_ref, w3_ref, b3_ref,
                  logits_ref, lse_ref):
    """One batch tile: 3 MXU matmuls + tanh + stabilized logsumexp (natural shapes)."""
    x = x_ref[...]

    # dense1 + tanh  (bf16 or f32 MXU dot, f32 accumulation)
    h1 = jnp.tanh(
        jnp.dot(x, w1_ref[...], preferred_element_type=jnp.float32) + b1_ref[...]
    )
    # dense2 + tanh  (activations stay f32; bf16 weights upcast once per tile, trivial)
    h2 = jnp.tanh(
        jnp.dot(h1, w2_ref[...].astype(jnp.float32),
                preferred_element_type=jnp.float32) + b2_ref[...]
    )
    # dense3 -> logits (N = action_dim; small-N matmul is fine, kernel is DMA-bound)
    logits = (
        jnp.dot(h2, w3_ref[...].astype(jnp.float32),
                preferred_element_type=jnp.float32) + b3_ref[...]
    )

    # Stabilized logsumexp across the (un-padded) action lanes.
    m = jnp.max(logits, axis=-1, keepdims=True)
    lse = m + jnp.log(jnp.sum(jnp.exp(logits - m), axis=-1, keepdims=True))

    logits_ref[...] = logits
    lse_ref[...] = lse


def init_params(key, state_dim, action_dim):
    """nn.Linear-style init (uniform +/- 1/sqrt(fan_in)); weights stored (in, out)."""
    dims = [(state_dim, 128), (128, 64), (64, action_dim)]
    params = []
    for fan_in, fan_out in dims:
        key, kw, kb = jax.random.split(key, 3)
        bound = 1.0 / np.sqrt(fan_in)
        w = jax.random.uniform(kw, (fan_in, fan_out), jnp.float32, -bound, bound)
        b = jax.random.uniform(kb, (1, fan_out), jnp.float32, -bound, bound)
        params += [w, b]
    return tuple(params)


def prepare_params(params, use_bf16=False):
    """One-time host-side prep: dtype casts hoisted out of the per-call path.

    Weights go to bf16 (optional) or f32; biases stay f32 (added after the f32
    accumulation).  Biases are shaped (1, N) so they are 2-D VMEM tiles.
    """
    w1, b1, w2, b2, w3, b3 = params
    wd = jnp.bfloat16 if use_bf16 else jnp.float32
    return (
        jnp.asarray(w1, jnp.float32).astype(wd),
        jnp.asarray(b1, jnp.float32).reshape(1, -1),
        jnp.asarray(w2, jnp.float32).astype(wd),
        jnp.asarray(b2, jnp.float32).reshape(1, -1),
        jnp.asarray(w3, jnp.float32).astype(wd),
        jnp.asarray(b3, jnp.float32).reshape(1, -1),
    )


def policy_forward(x, kernel_params, *, tile_b=512):
    """Policy forward pass as a single batch-tiled Pallas kernel.

    Returns (logits, log_probs) of shape (B, action_dim); log_probs are the
    Categorical distribution's normalized logits.
    """
    w1, b1, w2, b2, w3, b3 = kernel_params
    B, state_dim = x.shape
    action_dim = w3.shape[1]
    use_bf16 = w1.dtype == jnp.bfloat16
    sub = 16 if use_bf16 else 8  # minimum sublane tile for the x dtype

    # Cap the batch tile at ~B/2 so the grid has >=2 steps when possible
    # (lets the "parallel" axis use both TensorCores on v7x), keep it a
    # sublane multiple, and never below one sublane tile.
    tile_b = max(sub, min(int(tile_b), max((B + 1) // 2, 1)))
    tile_b = _round_up(tile_b, sub)
    grid = (pl.cdiv(B, tile_b),)

    x = x.astype(w1.dtype)

    def resident(shape):  # same block every grid step -> stays VMEM-resident
        return pl.BlockSpec(shape, lambda i: (0, 0))

    logits, lse = pl.pallas_call(
        policy_kernel,
        out_shape=(
            jax.ShapeDtypeStruct((B, action_dim), jnp.float32),
            jax.ShapeDtypeStruct((B, 1), jnp.float32),
        ),
        grid=grid,
        in_specs=[
            pl.BlockSpec((tile_b, state_dim), lambda i: (i, 0)),
            resident(w1.shape), resident(b1.shape),
            resident(w2.shape), resident(b2.shape),
            resident(w3.shape), resident(b3.shape),
        ],
        out_specs=(
            pl.BlockSpec((tile_b, action_dim), lambda i: (i, 0)),
            pl.BlockSpec((tile_b, 1), lambda i: (i, 0)),
        ),
        compiler_params=pltpu.CompilerParams(
            dimension_semantics=("parallel",)),  # shards batch across v7x's 2 TCs
    )(x, w1, b1, w2, b2, w3, b3)

    log_probs = logits - lse  # cheap, fuses in XLA
    return logits, log_probs


def policy_ref(x, params):
    """Pure-JAX reference."""
    w1, b1, w2, b2, w3, b3 = params
    h1 = jnp.tanh(x @ w1 + b1)
    h2 = jnp.tanh(h1 @ w2 + b2)
    logits = h2 @ w3 + b3
    logp = logits - jax.scipy.special.logsumexp(logits, axis=-1, keepdims=True)
    return logits, logp


if __name__ == "__main__":
    key = jax.random.PRNGKey(0)
    state_dim, action_dim = 32, 4

    k_param, k1, k2, k3 = jax.random.split(key, 4)
    params = init_params(k_param, state_dim, action_dim)
    kparams = prepare_params(params, use_bf16=False)

    # --- test 1: small batch (single grid step) ---
    x = jax.random.normal(k1, (8, state_dim), jnp.float32)
    logits, log_probs = policy_forward(x, kparams)
    jax.block_until_ready((logits, log_probs))
    ref_logits, ref_logp = policy_ref(x, params)
    np.testing.assert_allclose(np.asarray(logits), np.asarray(ref_logits),
                               rtol=1e-5, atol=1e-5)
    np.testing.assert_allclose(np.asarray(log_probs), np.asarray(ref_logp),
                               rtol=1e-5, atol=1e-5)
    np.testing.assert_allclose(np.exp(np.asarray(log_probs)).sum(-1),
                               np.ones(x.shape[0]), rtol=1e-5, atol=1e-5)

    # --- test 2: multi-step grid + partial final block (no host-side batch pad) ---
    x2 = jax.random.normal(k2, (100, state_dim), jnp.float32)
    logits2, logp2 = policy_forward(x2, kparams, tile_b=32)
    jax.block_until_ready((logits2, logp2))
    ref_logits2, ref_logp2 = policy_ref(x2, params)
    np.testing.assert_allclose(np.asarray(logits2), np.asarray(ref_logits2),
                               rtol=1e-5, atol=1e-5)
    np.testing.assert_allclose(np.asarray(logp2), np.asarray(ref_logp2),
                               rtol=1e-5, atol=1e-5)

    # --- test 3: tiny odd batch (partial sublane block) ---
    x3 = jax.random.normal(k3, (5, state_dim), jnp.float32)
    logits3, logp3 = policy_forward(x3, kparams)
    jax.block_until_ready((logits3, logp3))
    ref_logits3, ref_logp3 = policy_ref(x3, params)
    np.testing.assert_allclose(np.asarray(logits3), np.asarray(ref_logits3),
                               rtol=1e-5, atol=1e-5)
    np.testing.assert_allclose(np.asarray(logp3), np.asarray(ref_logp3),
                               rtol=1e-5, atol=1e-5)

    # --- test 4: bf16 weight path (f32 accumulation; distribution still normalized) ---
    kparams_bf16 = prepare_params(params, use_bf16=True)
    logits_bf, logp_bf = policy_forward(x, kparams_bf16)
    jax.block_until_ready((logits_bf, logp_bf))
    np.testing.assert_allclose(np.exp(np.asarray(logp_bf)).sum(-1),
                               np.ones(x.shape[0]), rtol=1e-5, atol=1e-5)
    np.testing.assert_allclose(np.asarray(logits_bf), np.asarray(ref_logits),
                               rtol=2e-2, atol=2e-2)

    # TODO(synk): Categorical.sample() / saved_log_probs / rewards bookkeeping is
    # stateful host-side logic outside the kernel; (logits, log_probs) returned here
    # fully parameterize the distribution.
    print("KERNEL_OK")
</pallas_src>

<mosaic_0001>
module attributes {stable_mosaic.version = 11 : i64} {
  func.func @policy_kernel(%arg0: i32, %arg1: memref<8x32xf32, #tpu.memory_space<vmem>>, %arg2: memref<32x128xf32, #tpu.memory_space<vmem>>, %arg3: memref<1x128xf32, #tpu.memory_space<vmem>>, %arg4: memref<128x64xf32, #tpu.memory_space<vmem>>, %arg5: memref<1x64xf32, #tpu.memory_space<vmem>>, %arg6: memref<64x4xf32, #tpu.memory_space<vmem>>, %arg7: memref<1x4xf32, #tpu.memory_space<vmem>>, %arg8: memref<8x4xf32, #tpu.memory_space<vmem>>, %arg9: memref<8x1xf32, #tpu.memory_space<vmem>>) attributes {dimension_semantics = [#tpu.dimension_semantics<parallel>], iteration_bounds = array<i64: 1>, scalar_prefetch = 0 : i64, scratch_operands = 0 : i64, tpu.core_type = #tpu.core_type<tc>, window_params = [{transform_indices = @transform_0, window_bounds = array<i64: 8, 32>}, {pipeline_mode = #tpu.pipeline_mode<synchronous>, transform_indices = @transform_1, window_bounds = array<i64: 32, 128>}, {pipeline_mode = #tpu.pipeline_mode<synchronous>, transform_indices = @transform_2, window_bounds = array<i64: 1, 128>}, {pipeline_mode = #tpu.pipeline_mode<synchronous>, transform_indices = @transform_3, window_bounds = array<i64: 128, 64>}, {pipeline_mode = #tpu.pipeline_mode<synchronous>, transform_indices = @transform_4, window_bounds = array<i64: 1, 64>}, {pipeline_mode = #tpu.pipeline_mode<synchronous>, transform_indices = @transform_5, window_bounds = array<i64: 64, 4>}, {pipeline_mode = #tpu.pipeline_mode<synchronous>, transform_indices = @transform_6, window_bounds = array<i64: 1, 4>}, {transform_indices = @transform_7, window_bounds = array<i64: 8, 4>}, {transform_indices = @transform_8, window_bounds = array<i64: 8, 1>}]} {
    %c0 = arith.constant 0 : index
    %c0_0 = arith.constant 0 : index
    %0 = vector.load %arg1[%c0, %c0_0] : memref<8x32xf32, #tpu.memory_space<vmem>>, vector<8x32xf32>
    %c0_1 = arith.constant 0 : index
    %c0_2 = arith.constant 0 : index
    %1 = vector.load %arg2[%c0_1, %c0_2] : memref<32x128xf32, #tpu.memory_space<vmem>>, vector<32x128xf32>
    %cst = arith.constant dense<0.000000e+00> : vector<8x128xf32>
    %2 = tpu.matmul %0, %1, %cst {dimension_numbers = #tpu.dot_dimension_numbers<[1], [0], [0], [1], [0, 0, 1, 1], [], []>} : vector<8x32xf32>, vector<32x128xf32>, vector<8x128xf32> -> vector<8x128xf32>
    %c0_3 = arith.constant 0 : index
    %c0_4 = arith.constant 0 : index
    %3 = vector.load %arg3[%c0_3, %c0_4] : memref<1x128xf32, #tpu.memory_space<vmem>>, vector<1x128xf32>
    %4 = vector.broadcast %3 : vector<1x128xf32> to vector<8x128xf32>
    %5 = arith.addf %2, %4 : vector<8x128xf32>
    %6 = math.tanh %5 : vector<8x128xf32>
    %c0_5 = arith.constant 0 : index
    %c0_6 = arith.constant 0 : index
    %7 = vector.load %arg4[%c0_5, %c0_6] : memref<128x64xf32, #tpu.memory_space<vmem>>, vector<128x64xf32>
    %cst_7 = arith.constant dense<0.000000e+00> : vector<8x64xf32>
    %8 = tpu.matmul %6, %7, %cst_7 {dimension_numbers = #tpu.dot_dimension_numbers<[1], [0], [0], [1], [0, 0, 1, 1], [], []>} : vector<8x128xf32>, vector<128x64xf32>, vector<8x64xf32> -> vector<8x64xf32>
    %c0_8 = arith.constant 0 : index
    %c0_9 = arith.constant 0 : index
    %9 = vector.load %arg5[%c0_8, %c0_9] : memref<1x64xf32, #tpu.memory_space<vmem>>, vector<1x64xf32>
    %10 = vector.broadcast %9 : vector<1x64xf32> to vector<8x64xf32>
    %11 = arith.addf %8, %10 : vector<8x64xf32>
    %12 = math.tanh %11 : vector<8x64xf32>
    %c0_10 = arith.constant 0 : index
    %c0_11 = arith.constant 0 : index
    %13 = vector.load %arg6[%c0_10, %c0_11] : memref<64x4xf32, #tpu.memory_space<vmem>>, vector<64x4xf32>
    %cst_12 = arith.constant dense<0.000000e+00> : vector<8x4xf32>
    %14 = tpu.matmul %12, %13, %cst_12 {dimension_numbers = #tpu.dot_dimension_numbers<[1], [0], [0], [1], [0, 0, 1, 1], [], []>} : vector<8x64xf32>, vector<64x4xf32>, vector<8x4xf32> -> vector<8x4xf32>
    %c0_13 = arith.constant 0 : index
    %c0_14 = arith.constant 0 : index
    %15 = vector.load %arg7[%c0_13, %c0_14] : memref<1x4xf32, #tpu.memory_space<vmem>>, vector<1x4xf32>
    %16 = vector.broadcast %15 : vector<1x4xf32> to vector<8x4xf32>
    %17 = arith.addf %14, %16 : vector<8x4xf32>
    %cst_15 = arith.constant dense<0xFF800000> : vector<8xf32>
    %18 = vector.multi_reduction <maximumf>, %17, %cst_15 [1] : vector<8x4xf32> to vector<8xf32>
    %19 = vector.shape_cast %18 : vector<8xf32> to vector<8x1xf32>
    %20 = vector.broadcast %19 : vector<8x1xf32> to vector<8x4xf32>
    %21 = arith.subf %17, %20 : vector<8x4xf32>
    %22 = math.exp %21 : vector<8x4xf32>
    %cst_16 = arith.constant dense<0.000000e+00> : vector<8xf32>
    %23 = vector.multi_reduction <add>, %22, %cst_16 [1] : vector<8x4xf32> to vector<8xf32>
    %24 = vector.shape_cast %23 : vector<8xf32> to vector<8x1xf32>
    %25 = math.log %24 : vector<8x1xf32>
    %26 = arith.addf %19, %25 : vector<8x1xf32>
    %c0_17 = arith.constant 0 : index
    %c0_18 = arith.constant 0 : index
    %27 = vector.load %arg8[%c0_17, %c0_18] : memref<8x4xf32, #tpu.memory_space<vmem>>, vector<8x4xf32>
    tpu.vector_store %arg8[%c0_17, %c0_18], %17 {strides = array<i32>} : memref<8x4xf32, #tpu.memory_space<vmem>>, vector<8x4xf32>,
    %c0_19 = arith.constant 0 : index
    %c0_20 = arith.constant 0 : index
    %28 = vector.load %arg9[%c0_19, %c0_20] : memref<8x1xf32, #tpu.memory_space<vmem>>, vector<8x1xf32>
    tpu.vector_store %arg9[%c0_19, %c0_20], %26 {strides = array<i32>} : memref<8x1xf32, #tpu.memory_space<vmem>>, vector<8x1xf32>,
    return
  }
  func.func @transform_0(%arg0: i32) -> (i32, i32) {
    %c0_i32 = arith.constant 0 : i32
    %c0_i32_0 = arith.constant 0 : i32
    return %arg0, %c0_i32 : i32, i32
  }
  func.func @transform_1(%arg0: i32) -> (i32, i32) {
    %c0_i32 = arith.constant 0 : i32
    %c0_i32_0 = arith.constant 0 : i32
    %c0_i32_1 = arith.constant 0 : i32
    return %c0_i32, %c0_i32_0 : i32, i32
  }
  func.func @transform_2(%arg0: i32) -> (i32, i32) {
    %c0_i32 = arith.constant 0 : i32
    %c0_i32_0 = arith.constant 0 : i32
    %c0_i32_1 = arith.constant 0 : i32
    return %c0_i32, %c0_i32_0 : i32, i32
  }
  func.func @transform_3(%arg0: i32) -> (i32, i32) {
    %c0_i32 = arith.constant 0 : i32
    %c0_i32_0 = arith.constant 0 : i32
    %c0_i32_1 = arith.constant 0 : i32
    return %c0_i32, %c0_i32_0 : i32, i32
  }
  func.func @transform_4(%arg0: i32) -> (i32, i32) {
    %c0_i32 = arith.constant 0 : i32
    %c0_i32_0 = arith.constant 0 : i32
    %c0_i32_1 = arith.constant 0 : i32
    return %c0_i32, %c0_i32_0 : i32, i32
  }
  func.func @transform_5(%arg0: i32) -> (i32, i32) {
    %c0_i32 = arith.constant 0 : i32
    %c0_i32_0 = arith.constant 0 : i32
    %c0_i32_1 = arith.constant 0 : i32
    return %c0_i32, %c0_i32_0 : i32, i32
  }
  func.func @transform_6(%arg0: i32) -> (i32, i32) {
    %c0_i32 = arith.constant 0 : i32
    %c0_i32_0 = arith.constant 0 : i32
    %c0_i32_1 = arith.constant 0 : i32
    return %c0_i32, %c0_i32_0 : i32, i32
  }
  func.func @transform_7(%arg0: i32) -> (i32, i32) {
    %c0_i32 = arith.constant 0 : i32
    %c0_i32_0 = arith.constant 0 : i32
    return %arg0, %c0_i32 : i32, i32
  }
  func.func @transform_8(%arg0: i32) -> (i32, i32) {
    %c0_i32 = arith.constant 0 : i32
    %c0_i32_0 = arith.constant 0 : i32
    return %arg0, %c0_i32 : i32, i32
  }
}

</mosaic_0001>

<bundles_post_ra>
// kernel: tpu_custom_call.1
= control target key start
LH: loop header
LB: loop body
LE: loop exit
PB: predicated region body
PF: predicated region fallthrough
CT: control target
= control target key end

     0   :  { %v476_v0 = vmov 0.0|0.0   ;;  %vm477_vm0 = vmmov 0   ;;  %v478_v4 = vmov 0.0   ;;  %vm40_vm1 = vcmask 261120   ;;  %s643_s1 = inlined_call_operand.vmem [shape: f32[32,128], index: 1, kind: input, shape index: {}]   ;;  %s644_s3 = inlined_call_operand.vmem [shape: f32[128,64], index: 3, kind: input, shape index: {}]   ;;  %s645_s0 = inlined_call_operand.vmem [shape: f32[8,32], index: 0, kind: input, shape index: {}]   ;;  %s646_s5 = inlined_call_operand.vmem [shape: f32[64,4], index: 5, kind: input, shape index: {}]   ;;  %s647_s2 = inlined_call_operand.vmem [shape: f32[1,128], index: 2, kind: input, shape index: {}]   ;;  %s648_s4 = inlined_call_operand.vmem [shape: f32[1,64], index: 4, kind: input, shape index: {}]   ;;  %s649_s6 = inlined_call_operand.vmem [shape: f32[1,4], index: 6, kind: input, shape index: {}]   ;;  %s650_s7 = inlined_call_operand.vmem [shape: f32[8,4], index: 7, kind: output, shape index: {0}]   ;;  %s651_s8 = inlined_call_operand.vmem [shape: f32[8,1], index: 8, kind: output, shape index: {1}]  }
   0x1   :  { %423 = vmatprep.subr.bf16.mxu0 %v476_v0  ;;  %v29_v1 = vld [vmem:[%s643_s1] sm:$0xff]  ;;  %v30_v2 = vld [vmem:[%s643_s1 + $0x8] sm:$0xff]  ;;  %v31_v3 = vld [vmem:[%s643_s1 + $0x10] sm:$0xff]  ;;  %366 = vmatprep.mubr.msk.f32.mxu0 %vm477_vm0, %v478_v4  ;;  %vm224_vm2 = vcmask 523264   ;;  %vm298_vm3 = vcmask 31744   ;;  %vm312_vm4 = vcmask 7168  }
   0x2   :  { %v424_v5 = vpack.c.bf16 %v30_v2, %v29_v1  ;;  %v32_v6 = vld [vmem:[%s643_s1 + $0x18] sm:$0xff]  ;;  %429 = vmatprep.subr.bf16.mxu1 %v476_v0  ;;  %v115_v7 = vld [vmem:[%s644_s3] sm:$0xff]  ;;  %401 = vmatprep.mubr.msk.f32.mxu1 %vm477_vm0, %v478_v4  ;;  %v116_v8 = vld [vmem:[%s644_s3 + $0x8] sm:$0xff] }
   0x3   :  { %v117_v9 = vld [vmem:[%s644_s3 + $0x10] sm:$0xff]  ;;  %v118_v10 = vld [vmem:[%s644_s3 + $0x18] sm:$0xff]  ;;  %v427_v11 = vpack.c.bf16 %v32_v6, %v31_v3  ;;  %v430_v12 = vpack.c.bf16 %v116_v8, %v115_v7  ;;  %v119_v14 = vld [vmem:[%s644_s3 + $0x20] sm:$0xff] }
   0x4   :  { %425 = vmatpush3.bf16.msra.mxu0 %v424_v5  ;;  %v433_v13 = vpack.c.bf16 %v118_v10, %v117_v9  ;;  %v120_v15 = vld [vmem:[%s644_s3 + $0x28] sm:$0xff]  ;;  %v28_v16 = vld [vmem:[%s645_s0] sm:$0xff]  ;;  %v121_v18 = vld [vmem:[%s644_s3 + $0x30] sm:$0xff] }
   0x5   :  { %426 = vmatprep.subr.bf16.mxu0 %v476_v0  ;;  %431 = vmatpush3.bf16.msra.mxu1 %v430_v12  ;;  %v436_v17 = vpack.c.bf16 %v120_v15, %v119_v14  ;;  %v122_v19 = vld [vmem:[%s644_s3 + $0x38] sm:$0xff]  ;;  %v123_v21 = vld [vmem:[%s644_s3 + $0x40] sm:$0xff]  ;;  %v124_v22 = vld [vmem:[%s644_s3 + $0x48] sm:$0xff] }
   0x6   :  { %432 = vmatprep.subr.bf16.mxu1 %v476_v0  ;;  %v439_v20 = vpack.c.bf16 %v122_v19, %v121_v18  ;;  %v442_v23 = vpack.c.bf16 %v124_v22, %v123_v21  ;;  %v125_v24 = vld [vmem:[%s644_s3 + $0x50] sm:$0xff]  ;;  %v126_v25 = vld [vmem:[%s644_s3 + $0x58] sm:$0xff]  ;;  %v127_v27 = vld [vmem:[%s644_s3 + $0x60] sm:$0xff] }
   0x7   :  { %v445_v26 = vpack.c.bf16 %v126_v25, %v125_v24  ;;  %v128_v28 = vld [vmem:[%s644_s3 + $0x68] sm:$0xff]  ;;  %v129_v30 = vld [vmem:[%s644_s3 + $0x70] sm:$0xff]  ;;  %v130_v31 = vld [vmem:[%s644_s3 + $0x78] sm:$0xff] }
   0x8   :  { %428 = vmatpush3.bf16.msra.mxu0 %v427_v11  ;;  %v448_v29 = vpack.c.bf16 %v128_v28, %v127_v27  ;;  %v451_v32 = vpack.c.bf16 %v130_v31, %v129_v30  ;;  %v209_v33 = vld [vmem:[%s646_s5] sm:$0xff]  ;;  %v210_v34 = vld [vmem:[%s646_s5 + $0x8] sm:$0xff]  ;;  %v211_v41 = vld [vmem:[%s646_s5 + $0x10] sm:$0xff] }
   0x9   :  { %453 = vmatprep.subr.bf16.mxu0 %v476_v0  ;;  %434 = vmatpush3.bf16.msra.mxu1 %v433_v13  ;;  %v454_v35 = vpack.c.bf16 %v210_v34, %v209_v33  ;;  %v322_v36 = vld [vmem:[%s647_s2] ss:$0 sm:$0xff]  ;;  %v212_v42 = vld [vmem:[%s646_s5 + $0x18] sm:$0xff]  ;;  %v214_v45 = vld [vmem:[%s646_s5 + $0x28] sm:$0xff] }
   0xa   :  { %435 = vmatprep.subr.bf16.mxu1 %v476_v0  ;;  %v457_v43 = vpack.c.bf16 %v212_v42, %v211_v41  ;;  %v213_v44 = vld [vmem:[%s646_s5 + $0x20] sm:$0xff]  ;;  %v215_v47 = vld [vmem:[%s646_s5 + $0x30] sm:$0xff]  ;;  %v216_v48 = vld [vmem:[%s646_s5 + $0x38] sm:$0xff] }
   0xb   :  { %367 = vmatmul.mubr.msk.f32.vlgmr.msra.gmra.mrb[0].mxu0 %vm40_vm1, %v28_v16  ;;  %v460_v46 = vpack.c.bf16 %v214_v45, %v213_v44  ;;  %v463_v49 = vpack.c.bf16 %v216_v48, %v215_v47  ;;  %v324_v50 = vld [vmem:[%s648_s4] ss:$0 sm:$0xff] }
   0xc   :  { %420 = vmatprep.mubr.msk.f32.mxu0 %vm477_vm0, %v478_v4  ;;  %455 = vmatpush3.bf16.msra.mxu0 %v454_v35  ;;  %v325_v55 = vld [vmem:[%s649_s6] ss:$0 sm:$0xff] }
   0xd   :  { %437 = vmatpush3.bf16.msra.mxu1 %v436_v17  ;;  %456 = vmatprep.subr.bf16.mxu0 %v476_v0 }
   0xe   :  { %438 = vmatprep.subr.bf16.mxu1 %v476_v0 }
  0x10   :  { %458 = vmatpush3.bf16.msra.mxu0 %v457_v43 }
  0x11   :  { %440 = vmatpush3.bf16.msra.mxu1 %v439_v20  ;;  %459 = vmatprep.subr.bf16.mxu0 %v476_v0 }
  0x12   :  { %441 = vmatprep.subr.bf16.mxu1 %v476_v0 }
  0x14   :  { %461 = vmatpush3.bf16.msra.mxu0 %v460_v46 }
  0x15   :  { %443 = vmatpush3.bf16.msra.mxu1 %v442_v23  ;;  %462 = vmatprep.subr.bf16.mxu0 %v476_v0 }
  0x16   :  { %444 = vmatprep.subr.bf16.mxu1 %v476_v0 }
  0x18   :  { %464 = vmatpush3.bf16.msra.mxu0 %v463_v49 }
  0x19   :  { %446 = vmatpush3.bf16.msra.mxu1 %v445_v26 }
  0x1a   :  { %447 = vmatprep.subr.bf16.mxu1 %v476_v0 }
  0x1d   :  { %449 = vmatpush3.bf16.msra.mxu1 %v448_v29 }
  0x1e   :  { %450 = vmatprep.subr.bf16.mxu1 %v476_v0 }
  0x21   :  { %452 = vmatpush3.bf16.msra.mxu1 %v451_v32 }
  0xde   :  { %v110_v37 = vpop.f32.mrb[0].mxu0 }
  0xdf   :  { %v111_v38 = vadd.f32 %v322_v36, %v110_v37  ;;  %v368_v39 = vpop.f32.mrb[1].mxu0 }
  0xe1   :  { %468 = vtanh.f32 %v111_v38 }
  0xeb   :  { %v469_v40 = vpop.eup %468 }
  0xec   :  { %402 = vmatmul.mubr.f32.vlgmr.msra.gmra.mrb[0].mxu1 %v469_v40 }
 0x1bf   :  { %v204_v51 = vpop.f32.mrb[0].mxu1 }
 0x1c0   :  { %v205_v52 = vadd.f32 %v324_v50, %v204_v51  ;;  %v403_v53 = vpop.f32.mrb[1].mxu1 }
 0x1c2   :  { %470 = vtanh.f32 %v205_v52 }
 0x1cc   :  { %v471_v54 = vpop.eup %470 }
 0x1cd   :  { %421 = vmatmul.mubr.msk.f32.vlgmr.msra.gmra.mrb[2].mxu0 %vm224_vm2, %v471_v54 }
 0x2a0   :  { %v294_v56 = vpop.f32.mrb[2].mxu0 }
 0x2a1   :  { %v295_v57 = vadd.f32 %v325_v55, %v294_v56  ;;  %v422_v58 = vpop.f32.mrb[3].mxu0 }
 0x2a3   :  { %v299_v59 = vsel %vm298_vm3, %v295_v57, -inf  ;;  %311 = vst.msk [vmem:[%s650_s7] sm:$0xff] %vm298_vm3, %v295_v57 }
 0x2a4   :  { %300 = vmax.xlane.f32.xlu0 %v299_v59 }
 0x331   :  { %v301_v60 = vpop.xlane.xlu0 %300 }
 0x332   :  { %v302_v61 = vsub.f32 %v295_v57, %v301_v60 }
 0x334   :  { %v303_v62 = vmul.f32 1.442695, %v302_v61 }
 0x336   :  { %472 = vpow2.f32 %v303_v62 }
 0x340   :  { %v473_v63 = vpop.eup %472 }
 0x341   :  { %v305_v0 = vsel %vm298_vm3, %v473_v63, 0.0 }
 0x342   :  { %306 = vadd.xlane.f32.xlu0 %v305_v0 }
 0x3cf   :  { %v307_v1 = vpop.xlane.xlu0 %306 }
 0x3d0   :  { %474 = vlog2.f32 %v307_v1 }
 0x3da   :  { %v475_v2 = vpop.eup %474 }
 0x3db   :  { %v309_v3 = vmul.f32 0.6931472, %v475_v2 }
 0x3dd   :  { %v310_v4 = vadd.f32 %v309_v3, %v301_v60 }
 0x3df   :  { %313 = vst.msk [vmem:[%s651_s8] sm:$0xff] %vm312_vm4, %v310_v4 }

</bundles_post_ra>
